<compile_context>
chip_gen: v7x
topology: tpu7x:2x2x1
jax: 0.10.0
libtpu: 0.0.40
codegen_flags: <defaults>
</compile_context>

<pallas_src>
import functools

import jax
import jax.numpy as jnp
from jax.experimental import pallas as pl
from jax.experimental.pallas import tpu as pltpu


def focal_loss_kernel(x_ref, tgt_ref, soft_ref, out_ref,
                      rowsum_ref, logp_acc, soft_acc,
                      *, alpha, gamma, beta, batch_size):
    pid = pl.program_id(0)

    # --- init (first grid step): zero accumulators, precompute trunc-rowsums ---
    @pl.when(pid == 0)
    def _():
        logp_acc[...] = jnp.zeros_like(logp_acc)
        soft_acc[...] = jnp.zeros_like(soft_acc)
        soft = soft_ref[...].astype(jnp.float32)                      # (C, C)
        # rowsum[c] = sum_k trunc(softlabel_matrix[c, k])  (torch int64 copy)
        rowsum_ref[...] = jnp.sum(jnp.trunc(soft), axis=-1, keepdims=True)  # (C,1)

    # --- per-tile work ---
    x = x_ref[...].astype(jnp.float32)            # (TB, C) logits
    tgt = tgt_ref[...]                            # (TB, 1) int32
    TB, C = x.shape

    # log_softmax(dim=-1)
    m = jnp.max(x, axis=-1, keepdims=True)
    z = x - m
    lse = jnp.log(jnp.sum(jnp.exp(z), axis=-1, keepdims=True))
    logp_mat = z - lse                            # (TB, C)

    # one_hot(target) for this tile
    iota = jax.lax.broadcasted_iota(jnp.int32, (TB, C), 1)
    onehot = (iota == tgt).astype(jnp.float32)    # (TB, C)

    # per-row target log-prob and per-row trunc-rowsum pick
    logp_t = jnp.sum(logp_mat * onehot, axis=-1, keepdims=True)       # (TB, 1)
    smooth_t = jnp.dot(onehot, rowsum_ref[...],
                       preferred_element_type=jnp.float32)            # (TB, 1)

    # accumulate full-batch sums (focal depends on the FULL-batch mean logp,
    # so it is applied only in the epilogue)
    logp_acc[...] += jnp.sum(logp_t, axis=0, keepdims=True)           # (1, 1)
    soft_acc[...] += jnp.sum(smooth_t, axis=0, keepdims=True)         # (1, 1)

    # --- epilogue (last grid step): focal scaling + final mean ---
    @pl.when(pid == pl.num_programs(0) - 1)
    def _():
        inv_b = 1.0 / batch_size
        logp = logp_acc[...] * inv_b              # scalar mean target log-prob
        p = jnp.exp(logp)
        focal = alpha * (1.0 - p) ** gamma * logp
        mean_smooth = soft_acc[...] * inv_b
        # loss_hard row-sum(onehot) == 1.0, folded directly:
        out_ref[...] = -focal * ((1.0 - beta) + beta * mean_smooth)


def _pick_batch_tile(B, C, block_rows, itemsize, vmem_budget=8 << 20):
    # cap rows so one double-buffered logits block stays well under the scoped
    # VMEM limit (conservative enough for v7x's 64 MiB physical VMEM)
    cap = max(8, (vmem_budget // max(1, 2 * C * itemsize)) // 8 * 8)
    tb = min(B, block_rows, cap)
    if tb >= B:
        return B
    tb = max(8, (tb // 8) * 8)
    while tb > 8 and B % tb != 0:
        tb -= 8
    return tb if B % tb == 0 else B


def focal_loss(x, target, softlabel_matrix, *, alpha=0.5, gamma=2, beta=0.2,
               block_rows=512):
    B, C = x.shape
    TB = _pick_batch_tile(B, C, block_rows, jnp.dtype(x.dtype).itemsize)
    grid = (B // TB,)
    tgt2d = target.astype(jnp.int32).reshape(B, 1)

    kernel = functools.partial(
        focal_loss_kernel, alpha=float(alpha), gamma=gamma, beta=float(beta),
        batch_size=float(B),
    )
    out = pl.pallas_call(
        kernel,
        out_shape=jax.ShapeDtypeStruct((1, 1), jnp.float32),
        grid_spec=pltpu.PrefetchScalarGridSpec(
            num_scalar_prefetch=0,
            grid=grid,
            in_specs=[
                pl.BlockSpec((TB, C), lambda i: (i, 0)),   # logits tile
                pl.BlockSpec((TB, 1), lambda i: (i, 0)),   # targets tile
                pl.BlockSpec((C, C), lambda i: (0, 0)),    # soft matrix, resident
            ],
            out_specs=pl.BlockSpec((1, 1), lambda i: (0, 0)),
            scratch_shapes=[
                pltpu.VMEM((C, 1), jnp.float32),   # trunc row-sums of soft matrix
                pltpu.VMEM((1, 1), jnp.float32),   # sum of target log-probs
                pltpu.VMEM((1, 1), jnp.float32),   # sum of picked trunc row-sums
            ],
        ),
        compiler_params=pltpu.CompilerParams(
            dimension_semantics=("arbitrary",),    # batch axis is a reduction
        ),
    )(x, tgt2d, softlabel_matrix)   # native dtypes; cast happens in-kernel
    return out[0, 0]


if __name__ == "__main__":
    key = jax.random.PRNGKey(0)
    B, C = 32, 16  # small batch / num_classes, consistent with the module
    k1, k2, k3 = jax.random.split(key, 3)
    x = jax.random.normal(k1, (B, C), dtype=jnp.float32)
    target = jax.random.randint(k2, (B,), 0, C, dtype=jnp.int32)
    softlabel = jax.random.uniform(k3, (C, C), dtype=jnp.float32) * 3.0

    alpha, gamma, beta = 0.5, 2, 0.2
    # block_rows=8 -> 4 grid steps: exercises init / accumulate / epilogue paths
    loss = focal_loss(x, target, softlabel, alpha=alpha, gamma=gamma, beta=beta,
                      block_rows=8)
    jax.block_until_ready(loss)

    # pure-JAX reference with identical semantics (incl. int64-copy truncation)
    logp_mat = jax.nn.log_softmax(x, axis=-1)
    logp_ref = jnp.mean(logp_mat[jnp.arange(B), target])
    p_ref = jnp.exp(logp_ref)
    onehot_ref = jax.nn.one_hot(target, C, dtype=jnp.float32)
    smooth_ref = jnp.trunc(softlabel[target])
    focal_ref = alpha * (1.0 - p_ref) ** gamma * logp_ref
    loss_hard = -focal_ref * jnp.sum(onehot_ref, axis=-1)
    loss_soft = -focal_ref * jnp.sum(smooth_ref, axis=-1)
    ref = jnp.mean((1.0 - beta) * loss_hard + beta * loss_soft)

    assert jnp.allclose(loss, ref, rtol=1e-5, atol=1e-6), (loss, ref)
    print("KERNEL_OK")
</pallas_src>

<mosaic_0001>
module attributes {stable_mosaic.version = 11 : i64} {
  func.func @focal_loss_kernel(%arg0: i32, %arg1: memref<8x16xf32, #tpu.memory_space<vmem>>, %arg2: memref<8x1xi32, #tpu.memory_space<vmem>>, %arg3: memref<16x16xf32, #tpu.memory_space<vmem>>, %arg4: memref<1x1xf32, #tpu.memory_space<vmem>>, %arg5: memref<16x1xf32, #tpu.memory_space<vmem>>, %arg6: memref<1x1xf32, #tpu.memory_space<vmem>>, %arg7: memref<1x1xf32, #tpu.memory_space<vmem>>) attributes {dimension_semantics = [#tpu.dimension_semantics<arbitrary>], iteration_bounds = array<i64: 4>, scalar_prefetch = 0 : i64, scratch_operands = 3 : i64, tpu.core_type = #tpu.core_type<tc>, window_params = [{transform_indices = @transform_0, window_bounds = array<i64: 8, 16>}, {transform_indices = @transform_1, window_bounds = array<i64: 8, 1>}, {pipeline_mode = #tpu.pipeline_mode<synchronous>, transform_indices = @transform_2, window_bounds = array<i64: 16, 16>}, {pipeline_mode = #tpu.pipeline_mode<synchronous>, transform_indices = @transform_3, window_bounds = array<i64: 1, 1>}]} {
    %c0_i32 = arith.constant 0 : i32
    %0 = arith.cmpi eq, %arg0, %c0_i32 : i32
    %1 = arith.extui %0 : i1 to i32
    %c0_i32_0 = arith.constant 0 : i32
    %2 = arith.cmpi ne, %1, %c0_i32_0 : i32
    scf.if %2 {
      %cst_20 = arith.constant 0.000000e+00 : f32
      %38 = vector.broadcast %cst_20 : f32 to vector<1x1xf32>
      %c0_21 = arith.constant 0 : index
      %c0_22 = arith.constant 0 : index
      %39 = vector.load %arg6[%c0_21, %c0_22] : memref<1x1xf32, #tpu.memory_space<vmem>>, vector<1x1xf32>
      tpu.vector_store %arg6[%c0_21, %c0_22], %38 {strides = array<i32>} : memref<1x1xf32, #tpu.memory_space<vmem>>, vector<1x1xf32>,
      %cst_23 = arith.constant 0.000000e+00 : f32
      %40 = vector.broadcast %cst_23 : f32 to vector<1x1xf32>
      %c0_24 = arith.constant 0 : index
      %c0_25 = arith.constant 0 : index
      %41 = vector.load %arg7[%c0_24, %c0_25] : memref<1x1xf32, #tpu.memory_space<vmem>>, vector<1x1xf32>
      tpu.vector_store %arg7[%c0_24, %c0_25], %40 {strides = array<i32>} : memref<1x1xf32, #tpu.memory_space<vmem>>, vector<1x1xf32>,
      %c0_26 = arith.constant 0 : index
      %c0_27 = arith.constant 0 : index
      %42 = vector.load %arg3[%c0_26, %c0_27] : memref<16x16xf32, #tpu.memory_space<vmem>>, vector<16x16xf32>
      %cst_28 = arith.constant 0.000000e+00 : f32
      %43 = vector.broadcast %cst_28 : f32 to vector<16x16xf32>
      %44 = arith.cmpf olt, %42, %43 : vector<16x16xf32>
      %45 = math.ceil %42 : vector<16x16xf32>
      %46 = math.floor %42 : vector<16x16xf32>
      %47 = arith.select %44, %45, %46 : vector<16x16xi1>, vector<16x16xf32>
      %cst_29 = arith.constant dense<0.000000e+00> : vector<16xf32>
      %48 = vector.multi_reduction <add>, %47, %cst_29 [1] : vector<16x16xf32> to vector<16xf32>
      %49 = vector.shape_cast %48 : vector<16xf32> to vector<16x1xf32>
      %c0_30 = arith.constant 0 : index
      %c0_31 = arith.constant 0 : index
      %50 = vector.load %arg5[%c0_30, %c0_31] : memref<16x1xf32, #tpu.memory_space<vmem>>, vector<16x1xf32>
      tpu.vector_store %arg5[%c0_30, %c0_31], %49 {strides = array<i32>} : memref<16x1xf32, #tpu.memory_space<vmem>>, vector<16x1xf32>,
    } else {
    }
    %c0 = arith.constant 0 : index
    %c0_1 = arith.constant 0 : index
    %3 = vector.load %arg1[%c0, %c0_1] : memref<8x16xf32, #tpu.memory_space<vmem>>, vector<8x16xf32>
    %c0_2 = arith.constant 0 : index
    %c0_3 = arith.constant 0 : index
    %4 = vector.load %arg2[%c0_2, %c0_3] : memref<8x1xi32, #tpu.memory_space<vmem>>, vector<8x1xi32>
    %cst = arith.constant dense<0xFF800000> : vector<8xf32>
    %5 = vector.multi_reduction <maximumf>, %3, %cst [1] : vector<8x16xf32> to vector<8xf32>
    %6 = vector.shape_cast %5 : vector<8xf32> to vector<8x1xf32>
    %7 = vector.broadcast %6 : vector<8x1xf32> to vector<8x16xf32>
    %8 = arith.subf %3, %7 : vector<8x16xf32>
    %9 = math.exp %8 : vector<8x16xf32>
    %cst_4 = arith.constant dense<0.000000e+00> : vector<8xf32>
    %10 = vector.multi_reduction <add>, %9, %cst_4 [1] : vector<8x16xf32> to vector<8xf32>
    %11 = vector.shape_cast %10 : vector<8xf32> to vector<8x1xf32>
    %12 = math.log %11 : vector<8x1xf32>
    %13 = vector.broadcast %12 : vector<8x1xf32> to vector<8x16xf32>
    %14 = arith.subf %8, %13 : vector<8x16xf32>
    %15 = tpu.iota {dimensions = array<i32: 1>} : vector<8x16xi32>
    %16 = vector.broadcast %4 : vector<8x1xi32> to vector<8x16xi32>
    %17 = arith.cmpi eq, %15, %16 : vector<8x16xi32>
    %18 = arith.extui %17 : vector<8x16xi1> to vector<8x16xi32>
    %19 = arith.sitofp %18 : vector<8x16xi32> to vector<8x16xf32>
    %20 = arith.mulf %14, %19 : vector<8x16xf32>
    %cst_5 = arith.constant dense<0.000000e+00> : vector<8xf32>
    %21 = vector.multi_reduction <add>, %20, %cst_5 [1] : vector<8x16xf32> to vector<8xf32>
    %22 = vector.shape_cast %21 : vector<8xf32> to vector<8x1xf32>
    %c0_6 = arith.constant 0 : index
    %c0_7 = arith.constant 0 : index
    %23 = vector.load %arg5[%c0_6, %c0_7] : memref<16x1xf32, #tpu.memory_space<vmem>>, vector<16x1xf32>
    %cst_8 = arith.constant dense<0.000000e+00> : vector<8x1xf32>
    %24 = tpu.matmul %19, %23, %cst_8 {dimension_numbers = #tpu.dot_dimension_numbers<[1], [0], [0], [1], [0, 0, 1, 1], [], []>} : vector<8x16xf32>, vector<16x1xf32>, vector<8x1xf32> -> vector<8x1xf32>
    %c0_9 = arith.constant 0 : index
    %c0_10 = arith.constant 0 : index
    %25 = vector.load %arg6[%c0_9, %c0_10] : memref<1x1xf32, #tpu.memory_space<vmem>>, vector<1x1xf32>
    %cst_11 = arith.constant dense<0.000000e+00> : vector<1xf32>
    %26 = vector.multi_reduction <add>, %22, %cst_11 [0] : vector<8x1xf32> to vector<1xf32>
    %27 = vector.shape_cast %26 : vector<1xf32> to vector<1x1xf32>
    %28 = arith.addf %25, %27 : vector<1x1xf32>
    %c0_12 = arith.constant 0 : index
    %c0_13 = arith.constant 0 : index
    %29 = vector.load %arg6[%c0_12, %c0_13] : memref<1x1xf32, #tpu.memory_space<vmem>>, vector<1x1xf32>
    tpu.vector_store %arg6[%c0_12, %c0_13], %28 {strides = array<i32>} : memref<1x1xf32, #tpu.memory_space<vmem>>, vector<1x1xf32>,
    %c0_14 = arith.constant 0 : index
    %c0_15 = arith.constant 0 : index
    %30 = vector.load %arg7[%c0_14, %c0_15] : memref<1x1xf32, #tpu.memory_space<vmem>>, vector<1x1xf32>
    %cst_16 = arith.constant dense<0.000000e+00> : vector<1xf32>
    %31 = vector.multi_reduction <add>, %24, %cst_16 [0] : vector<8x1xf32> to vector<1xf32>
    %32 = vector.shape_cast %31 : vector<1xf32> to vector<1x1xf32>
    %33 = arith.addf %30, %32 : vector<1x1xf32>
    %c0_17 = arith.constant 0 : index
    %c0_18 = arith.constant 0 : index
    %34 = vector.load %arg7[%c0_17, %c0_18] : memref<1x1xf32, #tpu.memory_space<vmem>>, vector<1x1xf32>
    tpu.vector_store %arg7[%c0_17, %c0_18], %33 {strides = array<i32>} : memref<1x1xf32, #tpu.memory_space<vmem>>, vector<1x1xf32>,
    %c3_i32 = arith.constant 3 : i32
    %35 = arith.cmpi eq, %arg0, %c3_i32 : i32
    %36 = arith.extui %35 : i1 to i32
    %c0_i32_19 = arith.constant 0 : i32
    %37 = arith.cmpi ne, %36, %c0_i32_19 : i32
    scf.if %37 {
      %c0_20 = arith.constant 0 : index
      %c0_21 = arith.constant 0 : index
      %38 = vector.load %arg6[%c0_20, %c0_21] : memref<1x1xf32, #tpu.memory_space<vmem>>, vector<1x1xf32>
      %cst_22 = arith.constant 3.125000e-02 : f32
      %39 = vector.broadcast %cst_22 : f32 to vector<1x1xf32>
      %40 = arith.mulf %38, %39 : vector<1x1xf32>
      %41 = math.exp %40 : vector<1x1xf32>
      %cst_23 = arith.constant 1.000000e+00 : f32
      %42 = vector.broadcast %cst_23 : f32 to vector<1x1xf32>
      %43 = arith.subf %42, %41 : vector<1x1xf32>
      %44 = arith.mulf %43, %43 : vector<1x1xf32>
      %cst_24 = arith.constant 5.000000e-01 : f32
      %45 = vector.broadcast %cst_24 : f32 to vector<1x1xf32>
      %46 = arith.mulf %45, %44 : vector<1x1xf32>
      %47 = arith.mulf %46, %40 : vector<1x1xf32>
      %c0_25 = arith.constant 0 : index
      %c0_26 = arith.constant 0 : index
      %48 = vector.load %arg7[%c0_25, %c0_26] : memref<1x1xf32, #tpu.memory_space<vmem>>, vector<1x1xf32>
      %cst_27 = arith.constant 3.125000e-02 : f32
      %49 = vector.broadcast %cst_27 : f32 to vector<1x1xf32>
      %50 = arith.mulf %48, %49 : vector<1x1xf32>
      %cst_28 = arith.constant 0.000000e+00 : f32
      %51 = vector.broadcast %cst_28 : f32 to vector<1x1xf32>
      %52 = arith.subf %51, %47 : vector<1x1xf32>
      %cst_29 = arith.constant 2.000000e-01 : f32
      %53 = vector.broadcast %cst_29 : f32 to vector<1x1xf32>
      %54 = arith.mulf %53, %50 : vector<1x1xf32>
      %cst_30 = arith.constant 8.000000e-01 : f32
      %55 = vector.broadcast %cst_30 : f32 to vector<1x1xf32>
      %56 = arith.addf %55, %54 : vector<1x1xf32>
      %57 = arith.mulf %52, %56 : vector<1x1xf32>
      %c0_31 = arith.constant 0 : index
      %c0_32 = arith.constant 0 : index
      %58 = vector.load %arg4[%c0_31, %c0_32] : memref<1x1xf32, #tpu.memory_space<vmem>>, vector<1x1xf32>
      tpu.vector_store %arg4[%c0_31, %c0_32], %57 {strides = array<i32>} : memref<1x1xf32, #tpu.memory_space<vmem>>, vector<1x1xf32>,
    } else {
    }
    return
  }
  func.func @transform_0(%arg0: i32) -> (i32, i32) {
    %c0_i32 = arith.constant 0 : i32
    %c0_i32_0 = arith.constant 0 : i32
    return %arg0, %c0_i32 : i32, i32
  }
  func.func @transform_1(%arg0: i32) -> (i32, i32) {
    %c0_i32 = arith.constant 0 : i32
    %c0_i32_0 = arith.constant 0 : i32
    return %arg0, %c0_i32 : i32, i32
  }
  func.func @transform_2(%arg0: i32) -> (i32, i32) {
    %c0_i32 = arith.constant 0 : i32
    %c0_i32_0 = arith.constant 0 : i32
    %c0_i32_1 = arith.constant 0 : i32
    return %c0_i32, %c0_i32_0 : i32, i32
  }
  func.func @transform_3(%arg0: i32) -> (i32, i32) {
    %c0_i32 = arith.constant 0 : i32
    %c0_i32_0 = arith.constant 0 : i32
    %c0_i32_1 = arith.constant 0 : i32
    return %c0_i32, %c0_i32_0 : i32, i32
  }
}

</mosaic_0001>

<bundles_post_ra>
// kernel: tpu_custom_call.1
= control target key start
LH: loop header
LB: loop body
LE: loop exit
PB: predicated region body
PF: predicated region fallthrough
CT: control target
= control target key end

     0   :  { %8 = vsyncpa [#allocation6], 0  ;;  %s516_s12 = smov 0   ;;  %s578_s0 = inlined_call_operand.vmem [shape: f32[32,16], index: 0, kind: input, shape index: {}]   ;;  %s579_s1 = inlined_call_operand.vmem [shape: s32[32,1], index: 1, kind: input, shape index: {}]   ;;  %s580_s2 = inlined_call_operand.vmem [shape: f32[16,16], index: 2, kind: input, shape index: {}]   ;;  %s581_s3 = inlined_call_operand.hbm [shape: f32[1,1], index: 3, kind: output, shape index: {}]  }
   0x1 LB: > { %s522_s13 = sadd.s32 4294967295, %s488_s12   ;;  %p401_p0 = scmp.ge.s32.totalorder %s488_s12, 1  ;;  %s488_s12 = sphi %s516_s12, %s14_s12  }
   0x2   : > { %p141_p1 = scmp.lt.s32.totalorder %s488_s12, 5 }
   0x4   : > { %p142_p2 = pnand %p401_p0, %p141_p1 }
   0x5   : > { %p163_p3 = scmp.lt.s32.totalorder (!%p142_p2), %s522_s13, 3  ;;  %p404_p4 = scmp.ne.s32.totalorder (!%p142_p2), %s522_s13, 0 }
   0x6   : > { %145 = sbr.rel (%p142_p2) target bundleno = 734 (0x2de), region = 32 }
   0xd   : > { %s164_s14 = scalar_select %p163_p3, %s522_s13, 3 }
   0xe   : > { %174 = sbr.rel (%p404_p4) target bundleno = 166 (0xa6), region = 36  ;;  %v178_v0 = vld [vmem:[%s580_s2] sm:$0xff] (!%p404_p4)  ;;  %vm188_vm0 = vcmask (!%p404_p4), 130048   ;;  %v179_v1 = vld [vmem:[%s580_s2 + $0x8] sm:$0xff] (!%p404_p4)  ;;  %vm175_vm3 = vcmask (!%p404_p4), 0   ;;  %v490_v10 = vmov (!%p404_p4), 0.0  }
   0xf   : > { %s402_s15 = sshll.u32 %s164_s14, 3  ;;  %vm180_vm1 = vcmp.lt.f32.partialorder (!%p404_p4), %v178_v0, 0.0  ;;  %v182_v2 = vceil.f32 (!%p404_p4), %v178_v0  ;;  %v184_v3 = vfloor.f32 (!%p404_p4), %v178_v0  ;;  %vm181_vm2 = vcmp.lt.f32.partialorder (!%p404_p4), %v179_v1, 0.0  ;;  %176 = vst.msk [vmem:[#allocation3] sm:$0x1] (!%p404_p4), %vm175_vm3, %v490_v10 }
  0x10   : > { %s531_s18 = scalar_lea.vmem %s578_s0, %s402_s15  ;;  %s170_s21 = scalar_lea.vmem %s579_s1, %s402_s15  ;;  %v183_v4 = vceil.f32 (!%p404_p4), %v179_v1  ;;  %v185_v5 = vfloor.f32 (!%p404_p4), %v179_v1  ;;  %177 = vst.msk [vmem:[#allocation4] sm:$0x1] (!%p404_p4), %vm175_vm3, %v490_v10  ;;  %vm195_vm4 = vcmask (!%p404_p4), 7168  }
  0x11   : > { %v186_v6 = vsel (!%p404_p4), %vm180_vm1, %v182_v2, %v184_v3 }
  0x12   : > { %v189_v7 = vsel (!%p404_p4), %vm188_vm0, %v186_v6, 0.0  ;;  %v187_v8 = vsel (!%p404_p4), %vm181_vm2, %v183_v4, %v185_v5 }
  0x13   : > { %190 = vadd.xlane.f32.xlu0 (!%p404_p4), %v189_v7  ;;  %v192_v9 = vsel (!%p404_p4), %vm188_vm0, %v187_v8, 0.0 }
  0x17   : > { %193 = vadd.xlane.f32.xlu0 %v192_v9 }
  0xa0   : > { %v191_v11 = vpop.xlane.xlu0 %190 }
  0xa1   : > { %196 = vst.msk [vmem:[#allocation2] sm:$0xff] %vm195_vm4, %v191_v11 }
  0xa4   : > { %v194_v12 = vpop.xlane.xlu0 %193 }
  0xa5   : > { %197 = vst.msk [vmem:[#allocation2 + $0x8] sm:$0xff] %vm195_vm4, %v194_v12 }
  0xa6 PF: > { %v199_v13 = vld [vmem:[%s170_s21] sm:$0xff]  ;;  %v491_v15 = vmov 0   ;;  %v492_v16 = vmov 0.0|0.0   ;;  %vm493_vm5 = vmmov 0   ;;  %v494_v19 = vmov 0.0   ;;  %p407_p5 = scmp.ne.s32.totalorder %s522_s13, 3 }
  0xa7   : > { %445 = vset.pattern.permute.xlu0 %v491_v15  ;;  %422 = vmatprep.subr.bf16.mxu0 %v492_v16  ;;  %v198_v20 = vld [vmem:[%s531_s18] sm:$0xff]  ;;  %vm200_vm6 = vcmask 130048   ;;  %v213_v22 = vlaneseq  ;;  %vm311_vm8 = vcmask 7168   ;;  %vm308_vm9 = vcmask 0   ;;  %v300_v54 = vld [vmem:[#allocation3] sm:$0x1] }
  0xa8   : > { %v225_v14 = vld [vmem:[#allocation2] sm:$0xff]  ;;  %216 = vperm.xlu0 %445, %v199_v13   ;;  %419 = vmatprep.mubr.msk.f32.mxu0 %vm493_vm5, %v494_v19  ;;  %v201_v21 = vsel %vm200_vm6, %v198_v20, -inf  ;;  %v310_v45 = vld [vmem:[#allocation4] sm:$0x1] }
  0xa9   : > { %v214_v23 = vand.u32 127, %v213_v22 }
  0xac   : > { %v226_v17 = vld [vmem:[#allocation2 + $0x8] sm:$0xff] }
  0xad   : > { %v423_v18 = vpack.c.bf16 %v226_v17, %v225_v14 }
  0xaf   : > { %424 = vmatpush3.bf16.msra.mxu0 %v423_v18 }
  0xc7   : > { %202 = vmax.xlane.f32.xlu0 %v201_v21 }
 0x127   : > { %v217_v24 = vpop.permute.xlu0 %216 }
 0x128   : > { %vm218_vm7 = vcmp.eq.s32.totalorder %v214_v23, %v217_v24 }
 0x129   : > { %v405_v25 = vsel %vm218_vm7, 1.0, %v494_v19 }
 0x12a   : > { %420 = vmatmul.mubr.msk.f32.vlgmr.msra.gmra.mrb[0].mxu0 %vm200_vm6, %v405_v25 }
 0x154   : > { %v203_v26 = vpop.xlane.xlu0 %202 }
 0x155   : > { %v204_v27 = vsub.f32 %v198_v20, %v203_v26 }
 0x157   : > { %v205_v28 = vmul.f32 1.442695, %v204_v27 }
 0x159   : > { %446 = vpow2.f32 %v205_v28 }
 0x163   : > { %v447_v29 = vpop.eup %446 }
 0x164   : > { %v207_v30 = vsel %vm200_vm6, %v447_v29, 0.0 }
 0x165   : > { %208 = vadd.xlane.f32.xlu1 %v207_v30 }
 0x1f2   : > { %v209_v31 = vpop.xlane.xlu1 %208 }
 0x1f3   : > { %448 = vlog2.f32 %v209_v31 }
 0x1fd   : > { %v449_v32 = vpop.eup %448  ;;  %v296_v33 = vpop.f32.mrb[0].mxu0 }
 0x1fe   : > { %v211_v34 = vmul.f32 0.6931472, %v449_v32  ;;  %v312_v35 = vsel %vm311_vm8, %v296_v33, 0.0  ;;  %v421_v36 = vpop.f32.mrb[1].mxu0 }
 0x1ff   : > { %v313_v37 = vrot.slane %v312_v35, 4 }
 0x200   : > { %v212_v38 = vsub.f32 %v204_v27, %v211_v34 }
 0x201   : > { %v314_v39 = vadd.f32 %v313_v37, %v312_v35 }
 0x202   : > { %v221_v40 = vmul.f32 %v405_v25, %v212_v38 }
 0x203   : > { %v315_v41 = vrot.slane %v314_v39, 2 }
 0x204   : > { %v222_v42 = vsel %vm200_vm6, %v221_v40, 0.0 }
 0x205   : > { %v316_v43 = vadd.f32 %v315_v41, %v314_v39  ;;  %223 = vadd.xlane.f32.xlu1 %v222_v42 }
 0x207   : > { %v317_v44 = vrot.slane %v316_v43, 1 }
 0x209   : > { %v318_v46 = vadd.f32 %v317_v44, %v316_v43 }
 0x20b   : > { %v319_v47 = vadd.f32 %v318_v46, %v310_v45 }
 0x20d   : > { %320 = vst.msk [vmem:[#allocation4] sm:$0x1] %vm308_vm9, %v319_v47 }
 0x214   : > { %v333_v60 = vld [vmem:[#allocation4] sm:$0x1] (!%p407_p5) }
 0x215   : > { %v334_v61 = vmul.f32 (!%p407_p5), 0.03125, %v333_v60 }
 0x217   : > { %v336_v1 = vmul.f32 (!%p407_p5), 0.2, %v334_v61 }
 0x219   : > { %v337_v4 = vadd.f32 (!%p407_p5), 0.8, %v336_v1 }
 0x292   : > { %v224_v48 = vpop.xlane.xlu1 %223 }
 0x293   : > { %v301_v49 = vrot.slane %v224_v48, 4 }
 0x295   : > { %v302_v50 = vadd.f32 %v301_v49, %v224_v48 }
 0x297   : > { %v303_v51 = vrot.slane %v302_v50, 2 }
 0x299   : > { %v304_v52 = vadd.f32 %v303_v51, %v302_v50 }
 0x29b   : > { %v305_v53 = vrot.slane %v304_v52, 1  ;;  %324 = sbr.rel (%p407_p5) target bundleno = 709 (0x2c5), region = 40 }
 0x29d   : > { %v306_v55 = vadd.f32 %v305_v53, %v304_v52 }
 0x29f   : > { %v307_v56 = vadd.f32 %v306_v55, %v300_v54 }
 0x2a1   : > { %309 = vst.msk [vmem:[#allocation3] sm:$0x1] %vm308_vm9, %v307_v56 }
 0x2a8   : > { %v325_v57 = vld [vmem:[#allocation3] sm:$0x1] }
 0x2a9   : > { %v326_v58 = vmul.f32 0.03125, %v325_v57 }
 0x2ab   : > { %v327_v59 = vmul.f32 1.442695, %v326_v58 }
 0x2ad   : > { %450 = vpow2.f32 %v327_v59 }
 0x2b7   : > { %v451_v62 = vpop.eup %450 }
 0x2b8   : > { %v329_v63 = vsub.f32 1.0, %v451_v62 }
 0x2ba   : > { %v330_v0 = vmul.f32 %v329_v63, %v329_v63 }
 0x2bc   : > { %v331_v2 = vmul.f32 0.5, %v330_v0 }
 0x2be   : > { %v332_v3 = vmul.f32 %v331_v2, %v326_v58 }
 0x2c0   : > { %v335_v5 = vsub.f32 0.0, %v332_v3 }
 0x2c2   : > { %v338_v6 = vmul.f32 %v337_v4, %v335_v5 }
 0x2c4   : > { %339 = vst.msk [vmem:[#allocation5] sm:$0x1] %vm308_vm9, %v338_v6 }
 0x2c5 PF: > { %p429_p6 = scmp.eq.s32.totalorder %s522_s13, 3  ;;  %s495_s26 = smov [#allocation5]  }
 0x2c6   : > { %s347_s27 = sshll.u32 %s495_s26, 4  ;;  %s348_s27 = int_to_ptr.vmem [resolvable:$true] %s347_s27 }
 0x2c7   : > { %s452_s28 = scalar_lea.vmem %s348_s27, 16  ;;  %s458_s29 = scalar_lea.vmem %s348_s27, 32 }
 0x2c8   : > { %p453_p7 = scmp.ne.s32.totalorder %s348_s27, %s452_s28  ;;  %p459_p10 = scmp.lt.s32.totalorder %s348_s27, %s348_s27 }
 0x2c9   : > { %p460_p11 = scmp.lt.s32.totalorder %s458_s29, %s452_s28 }
 0x2ca   : > { %p454_p8 = pnand %p453_p7, %p429_p6 }
 0x2cb   : > { %p461_p12 = por %p460_p11, %p459_p10 }
 0x2cc   : > { %p455_p9 = pneg %p454_p8 }
 0x2ce   : > { %p462_p13 = pnand %p461_p12, %p455_p9 }
 0x2d0   : > { %465 = shalt.err (!%p462_p13)
}
 0x2d1   : > { %s466_s5 = scalar_lea.hbm %s581_s3, 16 }
 0x2d2   : > { %p467_p0 = scmp.ne.s32.totalorder %s581_s3, %s466_s5  ;;  %p472_p3 = scmp.lt.u32.totalorder %s466_s5, %s581_s3 }
 0x2d4   : > { %p468_p1 = pnand %p467_p0, %p429_p6 }
 0x2d6   : > { %p469_p2 = pneg %p468_p1 }
 0x2d8   : > { %p474_p4 = pnand %p472_p3, %p469_p2 }
 0x2da   : > { %477 = shalt.err (!%p474_p4)
}
 0x2db   : > { %426 = dma.vmem_to_hbm [thread:$0]  (%p429_p6), %s348_s27, 16, %s581_s3, [#allocation6]  }
 0x2dc   : > { %483 = dma.done.wait (%p429_p6), [#allocation6], 16  }
 0x2dd   : > { %485 = vsyncadd (%p429_p6), [#allocation6], 4294967280 }
 0x2de PF: > { %s14_s12 = sadd.s32 1, %s488_s12  }
 0x2df   : > { %p11_p5 = scmp.ge.s32.totalorder %s14_s12, 6  }
 0x2e1   :  { %13 = sbr.rel (!%p11_p5) target bundleno = 1 (0x1), region = 70 }
 0x2e8   :  { %360 = vsyncpa [#allocation6], 1 }
 0x2e9   :  { %362 = vsyncpa [#allocation6 + $0x1], 1 }

</bundles_post_ra>
